<compile_context>
chip_gen: v5e
topology: v5e:2x2
jax: 0.10.0
libtpu: 0.0.40
codegen_flags: <defaults>
</compile_context>

<pallas_src>
import functools

import jax
import jax.numpy as jnp
from jax.experimental import pallas as pl
from jax.experimental.pallas import tpu as pltpu

_BN_EPS = 1e-5


def _round_up(x, m):
    return (x + m - 1) // m * m


# --------------------------------------------------------------------------- #
# Stage 1: h = x @ W1 + b1   (bf16 MXU, f32 accum)  +  per-tile BN partial stats
# --------------------------------------------------------------------------- #
def _stage1_kernel(n_ref, x_ref, w1_ref, b1_ref, h_ref, psum_ref, psq_ref):
    i = pl.program_id(0)

    h = jnp.dot(x_ref[...], w1_ref[...], preferred_element_type=jnp.float32)
    h = h + b1_ref[...]                               # f32 [tile_n, mid_p]
    h_ref[...] = h

    # Mask padded rows (global row >= actual node count) out of the statistics.
    tile_n = h.shape[0]
    row = i * tile_n + jax.lax.broadcasted_iota(jnp.int32, h.shape, 0)
    hm = jnp.where(row < n_ref[0], h, 0.0)

    psum_ref[...] = jnp.sum(hm, axis=0, keepdims=True).reshape(psum_ref.shape)
    psq_ref[...] = jnp.sum(hm * hm, axis=0, keepdims=True).reshape(psq_ref.shape)


# --------------------------------------------------------------------------- #
# Stage 2: finalize BN stats, normalize + affine + ReLU, out = h @ W2 + b2
# --------------------------------------------------------------------------- #
def _stage2_kernel(n_ref, h_ref, psum_ref, psq_ref, gamma_ref, beta_ref,
                   w2_ref, b2_ref, o_ref):
    n = n_ref[0].astype(jnp.float32)
    total = jnp.sum(psum_ref[...], axis=0)            # [1, mid_p]
    totsq = jnp.sum(psq_ref[...], axis=0)             # [1, mid_p]
    mean = total / n
    var = jnp.maximum(totsq / n - mean * mean, 0.0)   # biased var (training mode)
    scale = gamma_ref[...] * jax.lax.rsqrt(var + _BN_EPS)
    shift = beta_ref[...] - mean * scale

    hn = jnp.maximum(h_ref[...] * scale + shift, 0.0)            # BN + ReLU (f32)
    out = jnp.dot(hn.astype(jnp.bfloat16), w2_ref[...],
                  preferred_element_type=jnp.float32)
    o_ref[...] = (out + b2_ref[...]).astype(o_ref.dtype)


# --------------------------------------------------------------------------- #
# Wrapper
# --------------------------------------------------------------------------- #
def mlp_layer_forward(nfeat, w1, b1, gamma, beta, w2, b2, *, tile_n=512):
    """nfeat: [N, input_dim] float32. Returns [N, output_dim] float32."""
    n, in_dim = nfeat.shape
    mid_dim = w1.shape[1]
    out_dim = w2.shape[1]

    f32, bf16 = jnp.float32, jnp.bfloat16

    # Lane-dense padding: every feature dim to a multiple of 128.
    in_p = _round_up(in_dim, 128)
    mid_p = _round_up(mid_dim, 128)
    out_p = _round_up(out_dim, 128)
    # Node tiling (sublane axis): clamp tile to the problem size, keep 8-aligned.
    tile_n = max(8, min(_round_up(tile_n, 8), _round_up(n, 8)))
    n_p = _round_up(n, tile_n)
    num_tiles = n_p // tile_n

    # Zero-padded operands. Padded rows/cols are mathematically inert:
    #  - padded input cols x padded W1 rows contribute 0 to h
    #  - padded mid cols have h == 0, gamma == beta == 0  -> stay 0 through BN/ReLU
    #  - padded node rows are masked out of the BN stats and sliced off at the end
    x_p = jnp.zeros((n_p, in_p), bf16).at[:n, :in_dim].set(nfeat.astype(bf16))
    w1_p = jnp.zeros((in_p, mid_p), bf16).at[:in_dim, :mid_dim].set(w1.astype(bf16))
    b1_p = jnp.zeros((1, mid_p), f32).at[:, :mid_dim].set(b1.reshape(1, -1))
    g_p = jnp.zeros((1, mid_p), f32).at[:, :mid_dim].set(gamma.reshape(1, -1))
    bt_p = jnp.zeros((1, mid_p), f32).at[:, :mid_dim].set(beta.reshape(1, -1))
    w2_p = jnp.zeros((mid_p, out_p), bf16).at[:mid_dim, :out_dim].set(w2.astype(bf16))
    b2_p = jnp.zeros((1, out_p), f32).at[:, :out_dim].set(b2.reshape(1, -1))
    n_sc = jnp.array([n], jnp.int32)

    grid = (num_tiles,)
    cparams = pltpu.CompilerParams(dimension_semantics=("parallel",))

    # ---- stage 1: input Linear + streaming BN partial statistics ----
    h, psum, psq = pl.pallas_call(
        _stage1_kernel,
        out_shape=(
            jax.ShapeDtypeStruct((n_p, mid_p), f32),            # h (pre-BN)
            jax.ShapeDtypeStruct((num_tiles, 1, mid_p), f32),   # per-tile sum
            jax.ShapeDtypeStruct((num_tiles, 1, mid_p), f32),   # per-tile sum of sq
        ),
        grid_spec=pltpu.PrefetchScalarGridSpec(
            num_scalar_prefetch=1,
            grid=grid,
            in_specs=[
                pl.BlockSpec((tile_n, in_p), lambda i, n_ref: (i, 0)),   # x tile
                pl.BlockSpec((in_p, mid_p), lambda i, n_ref: (0, 0)),    # W1 resident
                pl.BlockSpec((1, mid_p), lambda i, n_ref: (0, 0)),       # b1 resident
            ],
            out_specs=(
                pl.BlockSpec((tile_n, mid_p), lambda i, n_ref: (i, 0)),
                pl.BlockSpec((1, 1, mid_p), lambda i, n_ref: (i, 0, 0)),
                pl.BlockSpec((1, 1, mid_p), lambda i, n_ref: (i, 0, 0)),
            ),
        ),
        compiler_params=cparams,
    )(n_sc, x_p, w1_p, b1_p)

    # ---- stage 2: BN finalize + ReLU + output Linear ----
    out = pl.pallas_call(
        _stage2_kernel,
        out_shape=jax.ShapeDtypeStruct((n_p, out_p), f32),
        grid_spec=pltpu.PrefetchScalarGridSpec(
            num_scalar_prefetch=1,
            grid=grid,
            in_specs=[
                pl.BlockSpec((tile_n, mid_p), lambda i, n_ref: (i, 0)),         # h tile
                pl.BlockSpec((num_tiles, 1, mid_p), lambda i, n_ref: (0, 0, 0)),
                pl.BlockSpec((num_tiles, 1, mid_p), lambda i, n_ref: (0, 0, 0)),
                pl.BlockSpec((1, mid_p), lambda i, n_ref: (0, 0)),              # gamma
                pl.BlockSpec((1, mid_p), lambda i, n_ref: (0, 0)),              # beta
                pl.BlockSpec((mid_p, out_p), lambda i, n_ref: (0, 0)),          # W2
                pl.BlockSpec((1, out_p), lambda i, n_ref: (0, 0)),              # b2
            ],
            out_specs=pl.BlockSpec((tile_n, out_p), lambda i, n_ref: (i, 0)),
        ),
        compiler_params=cparams,
    )(n_sc, h, psum, psq, g_p, bt_p, w2_p, b2_p)

    return out[:n, :out_dim]


# --------------------------------------------------------------------------- #
# Params / reference
# --------------------------------------------------------------------------- #
def init_params(key, input_dim, middle_dim, output_dim):
    """Deterministic synthetic params. Linear weights stored as [in, out]."""
    k1, k2, k3, k4 = jax.random.split(key, 4)
    s1 = 1.0 / jnp.sqrt(input_dim)
    s2 = 1.0 / jnp.sqrt(middle_dim)
    w1 = jax.random.uniform(k1, (input_dim, middle_dim), jnp.float32, -s1, s1)
    b1 = jax.random.uniform(k2, (1, middle_dim), jnp.float32, -s1, s1)
    w2 = jax.random.uniform(k3, (middle_dim, output_dim), jnp.float32, -s2, s2)
    b2 = jax.random.uniform(k4, (1, output_dim), jnp.float32, -s2, s2)
    gamma = jnp.ones((1, middle_dim), jnp.float32)   # BN weight init
    beta = jnp.zeros((1, middle_dim), jnp.float32)   # BN bias init
    return w1, b1, gamma, beta, w2, b2


def reference_forward(nfeat, w1, b1, gamma, beta, w2, b2):
    h = nfeat @ w1 + b1
    mean = jnp.mean(h, axis=0, keepdims=True)
    var = jnp.mean((h - mean) ** 2, axis=0, keepdims=True)
    h = (h - mean) * jax.lax.rsqrt(var + _BN_EPS)
    h = h * gamma + beta
    h = jnp.maximum(h, 0.0)
    return h @ w2 + b2


if __name__ == "__main__":
    # Small but non-trivial: N not a multiple of the tile (exercises masking),
    # feature dims below 128 (exercises lane padding), multi-tile grid.
    input_dim, middle_dim, output_dim = 64, 96, 16
    n_nodes = 300

    key = jax.random.PRNGKey(0)
    k_x, k_p = jax.random.split(key)
    nfeat = jax.random.normal(k_x, (n_nodes, input_dim), jnp.float32)
    params = init_params(k_p, input_dim, middle_dim, output_dim)

    fwd = jax.jit(functools.partial(mlp_layer_forward, tile_n=128))
    out = jax.block_until_ready(fwd(nfeat, *params))

    ref = reference_forward(nfeat, *params)
    assert out.shape == (n_nodes, output_dim)
    # Tolerance deliberately loosened vs the f32 reference: MXU operands are bf16.
    assert jnp.allclose(out, ref, atol=2e-2, rtol=2e-2), "mismatch vs reference"

    print("KERNEL_OK")
</pallas_src>

<mosaic_0001>
module attributes {stable_mosaic.version = 11 : i64} {
  func.func @_stage1_kernel(%arg0: i32, %arg1: memref<1xi32, #tpu.memory_space<smem>>, %arg2: memref<128x128xbf16, #tpu.memory_space<vmem>>, %arg3: memref<128x128xbf16, #tpu.memory_space<vmem>>, %arg4: memref<1x128xf32, #tpu.memory_space<vmem>>, %arg5: memref<128x128xf32, #tpu.memory_space<vmem>>, %arg6: memref<1x1x128xf32, #tpu.memory_space<vmem>>, %arg7: memref<1x1x128xf32, #tpu.memory_space<vmem>>) attributes {dimension_semantics = [#tpu.dimension_semantics<parallel>], iteration_bounds = array<i64: 3>, scalar_prefetch = 1 : i64, scratch_operands = 0 : i64, tpu.core_type = #tpu.core_type<tc>, window_params = [{transform_indices = @transform_0, window_bounds = array<i64: 128, 128>}, {pipeline_mode = #tpu.pipeline_mode<synchronous>, transform_indices = @transform_1, window_bounds = array<i64: 128, 128>}, {pipeline_mode = #tpu.pipeline_mode<synchronous>, transform_indices = @transform_2, window_bounds = array<i64: 1, 128>}, {transform_indices = @transform_3, window_bounds = array<i64: 128, 128>}, {transform_indices = @transform_4, window_bounds = array<i64: 1, 1, 128>}, {transform_indices = @transform_5, window_bounds = array<i64: 1, 1, 128>}]} {
    %c0 = arith.constant 0 : index
    %c0_0 = arith.constant 0 : index
    %0 = vector.load %arg2[%c0, %c0_0] : memref<128x128xbf16, #tpu.memory_space<vmem>>, vector<128x128xbf16>
    %c0_1 = arith.constant 0 : index
    %c0_2 = arith.constant 0 : index
    %1 = vector.load %arg3[%c0_1, %c0_2] : memref<128x128xbf16, #tpu.memory_space<vmem>>, vector<128x128xbf16>
    %cst = arith.constant dense<0.000000e+00> : vector<128x128xf32>
    %2 = tpu.matmul %0, %1, %cst {dimension_numbers = #tpu.dot_dimension_numbers<[1], [0], [0], [1], [0, 0, 1, 1], [], []>} : vector<128x128xbf16>, vector<128x128xbf16>, vector<128x128xf32> -> vector<128x128xf32>
    %c0_3 = arith.constant 0 : index
    %c0_4 = arith.constant 0 : index
    %3 = vector.load %arg4[%c0_3, %c0_4] : memref<1x128xf32, #tpu.memory_space<vmem>>, vector<1x128xf32>
    %4 = vector.broadcast %3 : vector<1x128xf32> to vector<128x128xf32>
    %5 = arith.addf %2, %4 : vector<128x128xf32>
    %c0_5 = arith.constant 0 : index
    %c0_6 = arith.constant 0 : index
    %6 = vector.load %arg5[%c0_5, %c0_6] : memref<128x128xf32, #tpu.memory_space<vmem>>, vector<128x128xf32>
    tpu.vector_store %arg5[%c0_5, %c0_6], %5 {strides = array<i32>} : memref<128x128xf32, #tpu.memory_space<vmem>>, vector<128x128xf32>,
    %c128_i32 = arith.constant 128 : i32
    %7 = arith.muli %arg0, %c128_i32 : i32
    %8 = tpu.iota {dimensions = array<i32: 0>} : vector<128x128xi32>
    %9 = vector.broadcast %7 : i32 to vector<128x128xi32>
    %10 = arith.addi %9, %8 : vector<128x128xi32>
    %c0_7 = arith.constant 0 : index
    %11 = memref.load %arg1[%c0_7] : memref<1xi32, #tpu.memory_space<smem>>
    %12 = vector.broadcast %11 : i32 to vector<128x128xi32>
    %13 = arith.cmpi slt, %10, %12 : vector<128x128xi32>
    %cst_8 = arith.constant 0.000000e+00 : f32
    %14 = vector.broadcast %cst_8 : f32 to vector<128x128xf32>
    %15 = arith.select %13, %5, %14 : vector<128x128xi1>, vector<128x128xf32>
    %cst_9 = arith.constant dense<0.000000e+00> : vector<128xf32>
    %16 = vector.multi_reduction <add>, %15, %cst_9 [0] : vector<128x128xf32> to vector<128xf32>
    %17 = vector.shape_cast %16 : vector<128xf32> to vector<1x128xf32>
    %18 = vector.shape_cast %17 : vector<1x128xf32> to vector<1x1x128xf32>
    %c0_10 = arith.constant 0 : index
    %c0_11 = arith.constant 0 : index
    %c0_12 = arith.constant 0 : index
    %19 = vector.load %arg6[%c0_10, %c0_11, %c0_12] : memref<1x1x128xf32, #tpu.memory_space<vmem>>, vector<1x1x128xf32>
    tpu.vector_store %arg6[%c0_10, %c0_11, %c0_12], %18 {strides = array<i32>} : memref<1x1x128xf32, #tpu.memory_space<vmem>>, vector<1x1x128xf32>,
    %20 = arith.mulf %15, %15 : vector<128x128xf32>
    %cst_13 = arith.constant dense<0.000000e+00> : vector<128xf32>
    %21 = vector.multi_reduction <add>, %20, %cst_13 [0] : vector<128x128xf32> to vector<128xf32>
    %22 = vector.shape_cast %21 : vector<128xf32> to vector<1x128xf32>
    %23 = vector.shape_cast %22 : vector<1x128xf32> to vector<1x1x128xf32>
    %c0_14 = arith.constant 0 : index
    %c0_15 = arith.constant 0 : index
    %c0_16 = arith.constant 0 : index
    %24 = vector.load %arg7[%c0_14, %c0_15, %c0_16] : memref<1x1x128xf32, #tpu.memory_space<vmem>>, vector<1x1x128xf32>
    tpu.vector_store %arg7[%c0_14, %c0_15, %c0_16], %23 {strides = array<i32>} : memref<1x1x128xf32, #tpu.memory_space<vmem>>, vector<1x1x128xf32>,
    return
  }
  func.func @transform_0(%arg0: i32, %arg1: memref<1xi32, #tpu.memory_space<smem>>) -> (i32, i32) {
    %c0_i32 = arith.constant 0 : i32
    %c0_i32_0 = arith.constant 0 : i32
    return %arg0, %c0_i32 : i32, i32
  }
  func.func @transform_1(%arg0: i32, %arg1: memref<1xi32, #tpu.memory_space<smem>>) -> (i32, i32) {
    %c0_i32 = arith.constant 0 : i32
    %c0_i32_0 = arith.constant 0 : i32
    %c0_i32_1 = arith.constant 0 : i32
    return %c0_i32, %c0_i32_0 : i32, i32
  }
  func.func @transform_2(%arg0: i32, %arg1: memref<1xi32, #tpu.memory_space<smem>>) -> (i32, i32) {
    %c0_i32 = arith.constant 0 : i32
    %c0_i32_0 = arith.constant 0 : i32
    %c0_i32_1 = arith.constant 0 : i32
    return %c0_i32, %c0_i32_0 : i32, i32
  }
  func.func @transform_3(%arg0: i32, %arg1: memref<1xi32, #tpu.memory_space<smem>>) -> (i32, i32) {
    %c0_i32 = arith.constant 0 : i32
    %c0_i32_0 = arith.constant 0 : i32
    return %arg0, %c0_i32 : i32, i32
  }
  func.func @transform_4(%arg0: i32, %arg1: memref<1xi32, #tpu.memory_space<smem>>) -> (i32, i32, i32) {
    %c0_i32 = arith.constant 0 : i32
    %c0_i32_0 = arith.constant 0 : i32
    %c0_i32_1 = arith.constant 0 : i32
    return %arg0, %c0_i32, %c0_i32_0 : i32, i32, i32
  }
  func.func @transform_5(%arg0: i32, %arg1: memref<1xi32, #tpu.memory_space<smem>>) -> (i32, i32, i32) {
    %c0_i32 = arith.constant 0 : i32
    %c0_i32_0 = arith.constant 0 : i32
    %c0_i32_1 = arith.constant 0 : i32
    return %arg0, %c0_i32, %c0_i32_0 : i32, i32, i32
  }
}

module attributes {stable_mosaic.version = 11 : i64} {
  func.func @_stage2_kernel(%arg0: i32, %arg1: memref<1xi32, #tpu.memory_space<smem>>, %arg2: memref<128x128xf32, #tpu.memory_space<vmem>>, %arg3: memref<3x1x128xf32, #tpu.memory_space<vmem>>, %arg4: memref<3x1x128xf32, #tpu.memory_space<vmem>>, %arg5: memref<1x128xf32, #tpu.memory_space<vmem>>, %arg6: memref<1x128xf32, #tpu.memory_space<vmem>>, %arg7: memref<128x128xbf16, #tpu.memory_space<vmem>>, %arg8: memref<1x128xf32, #tpu.memory_space<vmem>>, %arg9: memref<128x128xf32, #tpu.memory_space<vmem>>) attributes {dimension_semantics = [#tpu.dimension_semantics<parallel>], iteration_bounds = array<i64: 3>, scalar_prefetch = 1 : i64, scratch_operands = 0 : i64, tpu.core_type = #tpu.core_type<tc>, window_params = [{transform_indices = @transform_0, window_bounds = array<i64: 128, 128>}, {pipeline_mode = #tpu.pipeline_mode<synchronous>, transform_indices = @transform_1, window_bounds = array<i64: 3, 1, 128>}, {pipeline_mode = #tpu.pipeline_mode<synchronous>, transform_indices = @transform_2, window_bounds = array<i64: 3, 1, 128>}, {pipeline_mode = #tpu.pipeline_mode<synchronous>, transform_indices = @transform_3, window_bounds = array<i64: 1, 128>}, {pipeline_mode = #tpu.pipeline_mode<synchronous>, transform_indices = @transform_4, window_bounds = array<i64: 1, 128>}, {pipeline_mode = #tpu.pipeline_mode<synchronous>, transform_indices = @transform_5, window_bounds = array<i64: 128, 128>}, {pipeline_mode = #tpu.pipeline_mode<synchronous>, transform_indices = @transform_6, window_bounds = array<i64: 1, 128>}, {transform_indices = @transform_7, window_bounds = array<i64: 128, 128>}]} {
    %c0 = arith.constant 0 : index
    %0 = memref.load %arg1[%c0] : memref<1xi32, #tpu.memory_space<smem>>
    %1 = arith.sitofp %0 : i32 to f32
    %c0_0 = arith.constant 0 : index
    %c0_1 = arith.constant 0 : index
    %c0_2 = arith.constant 0 : index
    %2 = vector.load %arg3[%c0_0, %c0_1, %c0_2] : memref<3x1x128xf32, #tpu.memory_space<vmem>>, vector<3x1x128xf32>
    %cst = arith.constant dense<0.000000e+00> : vector<1x128xf32>
    %3 = vector.multi_reduction <add>, %2, %cst [0] : vector<3x1x128xf32> to vector<1x128xf32>
    %c0_3 = arith.constant 0 : index
    %c0_4 = arith.constant 0 : index
    %c0_5 = arith.constant 0 : index
    %4 = vector.load %arg4[%c0_3, %c0_4, %c0_5] : memref<3x1x128xf32, #tpu.memory_space<vmem>>, vector<3x1x128xf32>
    %cst_6 = arith.constant dense<0.000000e+00> : vector<1x128xf32>
    %5 = vector.multi_reduction <add>, %4, %cst_6 [0] : vector<3x1x128xf32> to vector<1x128xf32>
    %6 = vector.broadcast %1 : f32 to vector<1x128xf32>
    %7 = arith.divf %3, %6 : vector<1x128xf32>
    %8 = vector.broadcast %1 : f32 to vector<1x128xf32>
    %9 = arith.divf %5, %8 : vector<1x128xf32>
    %10 = arith.mulf %7, %7 : vector<1x128xf32>
    %11 = arith.subf %9, %10 : vector<1x128xf32>
    %cst_7 = arith.constant 0.000000e+00 : f32
    %12 = vector.broadcast %cst_7 : f32 to vector<1x128xf32>
    %13 = arith.maximumf %11, %12 : vector<1x128xf32>
    %c0_8 = arith.constant 0 : index
    %c0_9 = arith.constant 0 : index
    %14 = vector.load %arg5[%c0_8, %c0_9] : memref<1x128xf32, #tpu.memory_space<vmem>>, vector<1x128xf32>
    %cst_10 = arith.constant 9.99999974E-6 : f32
    %15 = vector.broadcast %cst_10 : f32 to vector<1x128xf32>
    %16 = arith.addf %13, %15 : vector<1x128xf32>
    %17 = math.rsqrt %16 : vector<1x128xf32>
    %18 = arith.mulf %14, %17 : vector<1x128xf32>
    %c0_11 = arith.constant 0 : index
    %c0_12 = arith.constant 0 : index
    %19 = vector.load %arg6[%c0_11, %c0_12] : memref<1x128xf32, #tpu.memory_space<vmem>>, vector<1x128xf32>
    %20 = arith.mulf %7, %18 : vector<1x128xf32>
    %21 = arith.subf %19, %20 : vector<1x128xf32>
    %c0_13 = arith.constant 0 : index
    %c0_14 = arith.constant 0 : index
    %22 = vector.load %arg2[%c0_13, %c0_14] : memref<128x128xf32, #tpu.memory_space<vmem>>, vector<128x128xf32>
    %23 = vector.broadcast %18 : vector<1x128xf32> to vector<128x128xf32>
    %24 = arith.mulf %22, %23 : vector<128x128xf32>
    %25 = vector.broadcast %21 : vector<1x128xf32> to vector<128x128xf32>
    %26 = arith.addf %24, %25 : vector<128x128xf32>
    %cst_15 = arith.constant 0.000000e+00 : f32
    %27 = vector.broadcast %cst_15 : f32 to vector<128x128xf32>
    %28 = arith.maximumf %26, %27 : vector<128x128xf32>
    %29 = arith.truncf %28 : vector<128x128xf32> to vector<128x128xbf16>
    %c0_16 = arith.constant 0 : index
    %c0_17 = arith.constant 0 : index
    %30 = vector.load %arg7[%c0_16, %c0_17] : memref<128x128xbf16, #tpu.memory_space<vmem>>, vector<128x128xbf16>
    %cst_18 = arith.constant dense<0.000000e+00> : vector<128x128xf32>
    %31 = tpu.matmul %29, %30, %cst_18 {dimension_numbers = #tpu.dot_dimension_numbers<[1], [0], [0], [1], [0, 0, 1, 1], [], []>} : vector<128x128xbf16>, vector<128x128xbf16>, vector<128x128xf32> -> vector<128x128xf32>
    %c0_19 = arith.constant 0 : index
    %c0_20 = arith.constant 0 : index
    %32 = vector.load %arg8[%c0_19, %c0_20] : memref<1x128xf32, #tpu.memory_space<vmem>>, vector<1x128xf32>
    %33 = vector.broadcast %32 : vector<1x128xf32> to vector<128x128xf32>
    %34 = arith.addf %31, %33 : vector<128x128xf32>
    %c0_21 = arith.constant 0 : index
    %c0_22 = arith.constant 0 : index
    %35 = vector.load %arg9[%c0_21, %c0_22] : memref<128x128xf32, #tpu.memory_space<vmem>>, vector<128x128xf32>
    tpu.vector_store %arg9[%c0_21, %c0_22], %34 {strides = array<i32>} : memref<128x128xf32, #tpu.memory_space<vmem>>, vector<128x128xf32>,
    return
  }
  func.func @transform_0(%arg0: i32, %arg1: memref<1xi32, #tpu.memory_space<smem>>) -> (i32, i32) {
    %c0_i32 = arith.constant 0 : i32
    %c0_i32_0 = arith.constant 0 : i32
    return %arg0, %c0_i32 : i32, i32
  }
  func.func @transform_1(%arg0: i32, %arg1: memref<1xi32, #tpu.memory_space<smem>>) -> (i32, i32, i32) {
    %c0_i32 = arith.constant 0 : i32
    %c0_i32_0 = arith.constant 0 : i32
    %c0_i32_1 = arith.constant 0 : i32
    %c0_i32_2 = arith.constant 0 : i32
    return %c0_i32, %c0_i32_0, %c0_i32_1 : i32, i32, i32
  }
  func.func @transform_2(%arg0: i32, %arg1: memref<1xi32, #tpu.memory_space<smem>>) -> (i32, i32, i32) {
    %c0_i32 = arith.constant 0 : i32
    %c0_i32_0 = arith.constant 0 : i32
    %c0_i32_1 = arith.constant 0 : i32
    %c0_i32_2 = arith.constant 0 : i32
    return %c0_i32, %c0_i32_0, %c0_i32_1 : i32, i32, i32
  }
  func.func @transform_3(%arg0: i32, %arg1: memref<1xi32, #tpu.memory_space<smem>>) -> (i32, i32) {
    %c0_i32 = arith.constant 0 : i32
    %c0_i32_0 = arith.constant 0 : i32
    %c0_i32_1 = arith.constant 0 : i32
    return %c0_i32, %c0_i32_0 : i32, i32
  }
  func.func @transform_4(%arg0: i32, %arg1: memref<1xi32, #tpu.memory_space<smem>>) -> (i32, i32) {
    %c0_i32 = arith.constant 0 : i32
    %c0_i32_0 = arith.constant 0 : i32
    %c0_i32_1 = arith.constant 0 : i32
    return %c0_i32, %c0_i32_0 : i32, i32
  }
  func.func @transform_5(%arg0: i32, %arg1: memref<1xi32, #tpu.memory_space<smem>>) -> (i32, i32) {
    %c0_i32 = arith.constant 0 : i32
    %c0_i32_0 = arith.constant 0 : i32
    %c0_i32_1 = arith.constant 0 : i32
    return %c0_i32, %c0_i32_0 : i32, i32
  }
  func.func @transform_6(%arg0: i32, %arg1: memref<1xi32, #tpu.memory_space<smem>>) -> (i32, i32) {
    %c0_i32 = arith.constant 0 : i32
    %c0_i32_0 = arith.constant 0 : i32
    %c0_i32_1 = arith.constant 0 : i32
    return %c0_i32, %c0_i32_0 : i32, i32
  }
  func.func @transform_7(%arg0: i32, %arg1: memref<1xi32, #tpu.memory_space<smem>>) -> (i32, i32) {
    %c0_i32 = arith.constant 0 : i32
    %c0_i32_0 = arith.constant 0 : i32
    return %arg0, %c0_i32 : i32, i32
  }
}

</mosaic_0001>

<bundles_post_ra>
// kernel: mlp_layer_forward.2
= control target key start
LH: loop header
LB: loop body
LE: loop exit
PB: predicated region body
PF: predicated region fallthrough
CT: control target
= control target key end

     0   :  { %s850_s23 = smov 0   ;;  %s1038_s0 = inlined_call_operand.<no memory space> [shape: s32[1], index: 0, kind: input, shape index: {}]   ;;  %s1039_s1 = inlined_call_operand.vmem [shape: bf16[384,128], index: 1, kind: input, shape index: {}]   ;;  %s1040_s2 = inlined_call_operand.vmem [shape: bf16[128,128], index: 2, kind: input, shape index: {}]   ;;  %s1041_s3 = inlined_call_operand.vmem [shape: f32[1,128], index: 3, kind: input, shape index: {}]   ;;  %s1042_s4 = inlined_call_operand.vmem [shape: f32[384,128], index: 4, kind: output, shape index: {0}]   ;;  %s1043_s5 = inlined_call_operand.vmem [shape: f32[3,1,128], index: 5, kind: output, shape index: {1}]   ;;  %s1044_s6 = inlined_call_operand.vmem [shape: f32[3,1,128], index: 6, kind: output, shape index: {2}]  }
   0x1   :  { %12 = sst [smem:[#allocation3]] %s1038_s0 }
   0x2 LB: > { %s856_s24 = sadd.s32 4294967295, %s810_s23   ;;  %p683_p0 = scmp.ge.s32.totalorder %s810_s23, 1  ;;  %s810_s23 = sphi %s850_s23, %s18_s23  }
   0x3   : > { %p195_p1 = scmp.lt.s32.totalorder %s810_s23, 4 }
   0x5   : > { %p196_p2 = pnand %p683_p0, %p195_p1 }
   0x6   : > { %s684_s8 = sshll.u32 (!%p196_p2), %s856_s24, 4  ;;  %s479_s28 = sld [smem:[#allocation3]] (!%p196_p2) }
   0x7   : > { %199 = sbr.rel (%p196_p2) target bundleno = 238 (0xee), region = 32  ;;  %p230_p3 = scmp.lt.s32.totalorder (!%p196_p2), %s684_s8, 47 }
   0x8   : > { %s752_s29 = sshll.u32 (!%p196_p2), %s856_s24, 7  ;;  %p241_p4 = scmp.lt.s32.totalorder (!%p196_p2), %s856_s24, 2 }
   0xc   : > { %v770_v0 = vld [vmem:[%s1040_s2 + $0x38] sm:$0xff]  ;;  %v769_v1 = vld [vmem:[%s1040_s2 + $0x30] sm:$0xff]  ;;  %v768_v2 = vld [vmem:[%s1040_s2 + $0x28] sm:$0xff]  ;;  %s1046_s8 = smov (!%p230_p3, %s684_s8), 47  ;;  %v445_v21 = vlaneseq  ;;  %v926_v33 = vstv %s752_s29  ;;  %s1048_s24 = smov (!%p241_p4, %s856_s24), 2 }
   0xd   : > { %379 = vmatpush.bf16.msra.mxu0 %v770_v0  ;;  %771 = vmatpush.bf16.msra.mxu1 %v770_v0  ;;  %v767_v3 = vld [vmem:[%s1040_s2 + $0x20] sm:$0xff]  ;;  %v766_v4 = vld [vmem:[%s1040_s2 + $0x18] sm:$0xff]  ;;  %v765_v5 = vld [vmem:[%s1040_s2 + $0x10] sm:$0xff]  ;;  %s685_s15 = sshll.u32 %s1046_s8, 2  ;;  %s687_s21 = sshll.u32 %s1046_s8, 3  ;;  %v938_v38 = vstv %s479_s28 }
   0xe   : > { %772 = vmatpush.bf16.msra.mxu2 %v770_v0  ;;  %773 = vmatpush.bf16.msra.mxu3 %v770_v0  ;;  %v764_v6 = vld [vmem:[%s1040_s2 + $0x8] sm:$0xff]  ;;  %v763_v7 = vld [vmem:[%s1040_s2] sm:$0xff]  ;;  %s233_s20 = scalar_lea.vmem %s1039_s1, %s685_s15  ;;  %s900_s27 = scalar_lea.vmem %s1042_s4, %s687_s21  ;;  %v909_v22 = vshrl.u32 %v445_v21, 7 }
   0xf   : > { %v755_v8 = vld [vmem:[%s233_s20] sm:$0xff]  ;;  %v757_v9 = vld [vmem:[%s233_s20 + $0x10] sm:$0xff]  ;;  %v756_v12 = vld [vmem:[%s233_s20 + $0x8] sm:$0xff]  ;;  %s243_s8 = scalar_lea.vmem %s1043_s5, %s1048_s24  ;;  %s246_s11 = scalar_lea.vmem %s1044_s6, %s1048_s24 }
  0x10   : > { %v759_v10 = vld [vmem:[%s233_s20 + $0x20] sm:$0xff]  ;;  %v761_v11 = vld [vmem:[%s233_s20 + $0x30] sm:$0xff]  ;;  %v758_v13 = vld [vmem:[%s233_s20 + $0x18] sm:$0xff]  ;;  %v447_v26 = vadd.s32 8, %v909_v22  ;;  %v448_v32 = vadd.s32 16, %v909_v22  ;;  %v463_v35 = vadd.s32 %v926_v33, %v909_v22  ;;  %v450_v36 = vadd.s32 32, %v909_v22 }
  0x11   : > { %380 = vmatpush.bf16.msra.mxu0 %v769_v1  ;;  %774 = vmatpush.bf16.msra.mxu1 %v769_v1  ;;  %v760_v14 = vld [vmem:[%s233_s20 + $0x28] sm:$0xff]  ;;  %v762_v15 = vld [vmem:[%s233_s20 + $0x38] sm:$0xff]  ;;  %v895_v16 = vld [vmem:[%s1041_s3] ss:$0 sm:$0xff]  ;;  %v451_v39 = vadd.s32 40, %v909_v22  ;;  %v449_v41 = vadd.s32 24, %v909_v22 }
  0x12   : > { %775 = vmatpush.bf16.msra.mxu2 %v769_v1  ;;  %776 = vmatpush.bf16.msra.mxu3 %v769_v1  ;;  %v464_v34 = vadd.s32 %v926_v33, %v447_v26  ;;  %v465_v37 = vadd.s32 %v926_v33, %v448_v32  ;;  %vm481_vm1 = vcmp.lt.s32.totalorder %v463_v35, %v938_v38  ;;  %v452_v52 = vadd.s32 48, %v909_v22 }
  0x13   : > { %v467_v49 = vadd.s32 %v926_v33, %v450_v36  ;;  %v468_v51 = vadd.s32 %v926_v33, %v451_v39  ;;  %v466_v53 = vadd.s32 %v926_v33, %v449_v41  ;;  %v454_v55 = vadd.s32 64, %v909_v22 }
  0x14   : > { %vm482_vm0 = vcmp.lt.s32.totalorder %v464_v34, %v938_v38  ;;  %vm483_vm2 = vcmp.lt.s32.totalorder %v465_v37, %v938_v38  ;;  %v453_v58 = vadd.s32 56, %v909_v22  ;;  %v469_v59 = vadd.s32 %v926_v33, %v452_v52 }
  0x15   : > { %381 = vmatpush.bf16.msra.mxu0 %v768_v2  ;;  %777 = vmatpush.bf16.msra.mxu1 %v768_v2  ;;  %vm485_vm3 = vcmp.lt.s32.totalorder %v467_v49, %v938_v38  ;;  %vm486_vm4 = vcmp.lt.s32.totalorder %v468_v51, %v938_v38  ;;  %v455_v60 = vadd.s32 72, %v909_v22  ;;  %vm484_vm5 = vcmp.lt.s32.totalorder %v466_v53, %v938_v38 }
  0x16   : > { %778 = vmatpush.bf16.msra.mxu2 %v768_v2  ;;  %779 = vmatpush.bf16.msra.mxu3 %v768_v2  ;;  %vm487_vm6 = vcmp.lt.s32.totalorder %v469_v59, %v938_v38  ;;  %v457_v21 = vadd.s32 88, %v909_v22  ;;  %v459_v41 = vadd.s32 104, %v909_v22  ;;  %v460_v52 = vadd.s32 112, %v909_v22 }
  0x19   : > { %382 = vmatpush.bf16.msra.mxu0 %v767_v3  ;;  %780 = vmatpush.bf16.msra.mxu1 %v767_v3 }
  0x1a   : > { %781 = vmatpush.bf16.msra.mxu2 %v767_v3  ;;  %782 = vmatpush.bf16.msra.mxu3 %v767_v3 }
  0x1d   : > { %383 = vmatpush.bf16.msra.mxu0 %v766_v4  ;;  %783 = vmatpush.bf16.msra.mxu1 %v766_v4 }
  0x1e   : > { %784 = vmatpush.bf16.msra.mxu2 %v766_v4  ;;  %785 = vmatpush.bf16.msra.mxu3 %v766_v4 }
  0x21   : > { %384 = vmatpush.bf16.msra.mxu0 %v765_v5  ;;  %786 = vmatpush.bf16.msra.mxu1 %v765_v5 }
  0x22   : > { %787 = vmatpush.bf16.msra.mxu2 %v765_v5  ;;  %788 = vmatpush.bf16.msra.mxu3 %v765_v5  ;;  %v471_v5 = vadd.s32 %v926_v33, %v454_v55 }
  0x24   : > { %vm489_vm7 = vcmp.lt.s32.totalorder %v471_v5, %v938_v38 }
  0x25   : > { %385 = vmatpush.bf16.msra.mxu0 %v764_v6  ;;  %789 = vmatpush.bf16.msra.mxu1 %v764_v6 }
  0x26   : > { %790 = vmatpush.bf16.msra.mxu2 %v764_v6  ;;  %791 = vmatpush.bf16.msra.mxu3 %v764_v6 }
  0x29   : > { %386 = vmatpush.bf16.msra.mxu0 %v763_v7  ;;  %792 = vmatpush.bf16.msra.mxu1 %v763_v7 }
  0x2a   : > { %793 = vmatpush.bf16.msra.mxu2 %v763_v7  ;;  %794 = vmatpush.bf16.msra.mxu3 %v763_v7 }
  0x2c   : > { %387 = vmatmul.bf16.vlgmr.msra.gmra.mxu0 %v755_v8  ;;  %397 = vmatmul.bf16.vlgmr.msra.gmra.mxu1 %v757_v9 }
  0x2d   : > { %407 = vmatmul.bf16.vlgmr.msra.gmra.mxu2 %v759_v10  ;;  %417 = vmatmul.bf16.vlgmr.msra.gmra.mxu3 %v761_v11  ;;  %v470_v11 = vadd.s32 %v926_v33, %v453_v58 }
  0x2f   : > { %vm488_vm8 = vcmp.lt.s32.totalorder %v470_v11, %v938_v38 }
  0x3c   : > { %392 = vmatmul.bf16.gmra.mxu0 %v756_v12  ;;  %402 = vmatmul.bf16.gmra.mxu1 %v758_v13 }
  0x3d   : > { %412 = vmatmul.bf16.gmra.mxu2 %v760_v14  ;;  %422 = vmatmul.bf16.gmra.mxu3 %v762_v15  ;;  %v456_v14 = vadd.s32 80, %v909_v22 }
  0xa9   : > { %v388_v17 = vpop.f32.mrf.mxu0  ;;  %v398_v18 = vpop.f32.mrf.mxu1 }
  0xaa   : > { %v389_v19 = vadd.f32 %v895_v16, %v388_v17  ;;  %v904_v20 = vadd.f32 %v895_v16, %v398_v18 }
  0xac   : > { %428 = vst [vmem:[%s900_s27] sm:$0xff] %v389_v19  ;;  %v497_v54 = vsel %vm481_vm1, %v389_v19, 0.0  ;;  %v501_v12 = vsel %vm485_vm3, %v904_v20, 0.0 }
  0xad   : > { %432 = vst [vmem:[%s900_s27 + $0x20] sm:$0xff] %v904_v20  ;;  %v535_v63 = vmul.f32 %v497_v54, %v497_v54  ;;  %v472_v20 = vadd.s32 %v926_v33, %v455_v60 }
  0xaf   : > { %vm490_vm9 = vcmp.lt.s32.totalorder %v472_v20, %v938_v38 }
  0xb0   : > { %v408_v23 = vpop.f32.mrf.mxu2  ;;  %v418_v24 = vpop.f32.mrf.mxu3 }
  0xb1   : > { %v390_v25 = vpop.f32.mrf.mxu0  ;;  %v400_v27 = vpop.f32.mrf.mxu1  ;;  %v914_v28 = vadd.f32 %v895_v16, %v408_v23  ;;  %v921_v31 = vadd.f32 %v895_v16, %v418_v24  ;;  %v539_v23 = vmul.f32 %v501_v12, %v501_v12 }
  0xb2   : > { %v391_v29 = vadd.f32 %v895_v16, %v390_v25  ;;  %v918_v30 = vadd.f32 %v895_v16, %v400_v27 }
  0xb3   : > { %436 = vst [vmem:[%s900_s27 + $0x40] sm:$0xff] %v914_v28 }
  0xb4   : > { %429 = vst [vmem:[%s900_s27 + $0x8] sm:$0xff] %v391_v29  ;;  %v498_v50 = vsel %vm482_vm0, %v391_v29, 0.0  ;;  %v502_v15 = vsel %vm486_vm4, %v918_v30, 0.0  ;;  %v458_v29 = vadd.s32 96, %v909_v22 }
  0xb5   : > { %433 = vst [vmem:[%s900_s27 + $0x28] sm:$0xff] %v918_v30  ;;  %v536_v57 = vmul.f32 %v498_v50, %v498_v50  ;;  %v513_v0 = vadd.f32 %v498_v50, %v497_v54  ;;  %v540_v26 = vmul.f32 %v502_v15, %v502_v15  ;;  %v473_v30 = vadd.s32 %v926_v33, %v456_v14 }
  0xb6   : > { %440 = vst [vmem:[%s900_s27 + $0x60] sm:$0xff] %v921_v31  ;;  %v475_v49 = vadd.s32 %v926_v33, %v458_v29  ;;  %v476_v54 = vadd.s32 %v926_v33, %v459_v41 }
  0xb7   : > { %v551_v9 = vadd.f32 %v536_v57, %v535_v63  ;;  %vm491_vm10 = vcmp.lt.s32.totalorder %v473_v30, %v938_v38 }
  0xb8   : > { %v410_v40 = vpop.f32.mrf.mxu2  ;;  %v420_v42 = vpop.f32.mrf.mxu3  ;;  %vm493_vm12 = vcmp.lt.s32.totalorder %v475_v49, %v938_v38  ;;  %vm494_vm13 = vcmp.lt.s32.totalorder %v476_v54, %v938_v38 }
  0xb9   : > { %v393_v43 = vpop.f32.mrf.mxu0  ;;  %v403_v44 = vpop.f32.mrf.mxu1  ;;  %v944_v45 = vadd.f32 %v895_v16, %v410_v40  ;;  %v949_v48 = vadd.f32 %v895_v16, %v420_v42  ;;  %v474_v42 = vadd.s32 %v926_v33, %v457_v21 }
  0xba   : > { %v394_v46 = vadd.f32 %v895_v16, %v393_v43  ;;  %v404_v47 = vadd.f32 %v895_v16, %v403_v44 }
  0xbb   : > { %437 = vst [vmem:[%s900_s27 + $0x48] sm:$0xff] %v944_v45  ;;  %v506_v53 = vsel %vm490_vm9, %v944_v45, 0.0  ;;  %vm492_vm11 = vcmp.lt.s32.totalorder %v474_v42, %v938_v38 }
  0xbc   : > { %430 = vst [vmem:[%s900_s27 + $0x10] sm:$0xff] %v394_v46  ;;  %v499_v56 = vsel %vm483_vm2, %v394_v46, 0.0  ;;  %v503_v27 = vsel %vm487_vm6, %v404_v47, 0.0  ;;  %v544_v59 = vmul.f32 %v506_v53, %v506_v53 }
  0xbd   : > { %434 = vst [vmem:[%s900_s27 + $0x30] sm:$0xff] %v404_v47  ;;  %v537_v1 = vmul.f32 %v499_v56, %v499_v56  ;;  %v514_v10 = vadd.f32 %v513_v0, %v499_v56  ;;  %v541_v43 = vmul.f32 %v503_v27, %v503_v27  ;;  %v505_v47 = vsel %vm489_vm7, %v914_v28, 0.0 }
  0xbe   : > { %441 = vst [vmem:[%s900_s27 + $0x68] sm:$0xff] %v949_v48  ;;  %v543_v55 = vmul.f32 %v505_v47, %v505_v47  ;;  %v461_v28 = vadd.s32 120, %v909_v22 }
  0xbf   : > { %v552_v17 = vadd.f32 %v551_v9, %v537_v1 }
  0xc0   : > { %v413_v61 = vpop.f32.mrf.mxu2  ;;  %v423_v62 = vpop.f32.mrf.mxu3 }
  0xc1   : > { %v395_v2 = vpop.f32.mrf.mxu0  ;;  %v405_v3 = vpop.f32.mrf.mxu1  ;;  %v414_v4 = vadd.f32 %v895_v16, %v413_v61  ;;  %v975_v8 = vadd.f32 %v895_v16, %v423_v62  ;;  %v477_v62 = vadd.s32 %v926_v33, %v460_v52 }
  0xc2   : > { %v396_v6 = vadd.f32 %v895_v16, %v395_v2  ;;  %v406_v7 = vadd.f32 %v895_v16, %v405_v3  ;;  %v478_v2 = vadd.s32 %v926_v33, %v461_v28  ;;  %v509_v3 = vsel %vm493_vm12, %v921_v31, 0.0 }
  0xc3   : > { %438 = vst [vmem:[%s900_s27 + $0x50] sm:$0xff] %v414_v4  ;;  %v507_v58 = vsel %vm491_vm10, %v414_v4, 0.0  ;;  %vm495_vm14 = vcmp.lt.s32.totalorder %v477_v62, %v938_v38  ;;  %v510_v4 = vsel %vm494_vm13, %v949_v48, 0.0 }
  0xc4   : > { %431 = vst [vmem:[%s900_s27 + $0x18] sm:$0xff] %v396_v6  ;;  %v500_v13 = vsel %vm484_vm5, %v396_v6, 0.0  ;;  %v504_v40 = vsel %vm488_vm8, %v406_v7, 0.0  ;;  %v545_v0 = vmul.f32 %v507_v58, %v507_v58  ;;  %vm496_vm15 = vcmp.lt.s32.totalorder %v478_v2, %v938_v38 }
  0xc5   : > { %v515_v18 = vadd.f32 %v514_v10, %v500_v13  ;;  %v538_v19 = vmul.f32 %v500_v13, %v500_v13  ;;  %435 = vst [vmem:[%s900_s27 + $0x38] sm:$0xff] %v406_v7  ;;  %v542_v50 = vmul.f32 %v504_v40, %v504_v40  ;;  %v547_v7 = vmul.f32 %v509_v3, %v509_v3 }
  0xc6   : > { %442 = vst [vmem:[%s900_s27 + $0x70] sm:$0xff] %v975_v8  ;;  %v511_v11 = vsel %vm495_vm14, %v975_v8, 0.0 }
  0xc7   : > { %v516_v24 = vadd.f32 %v515_v18, %v501_v12  ;;  %v553_v25 = vadd.f32 %v552_v17, %v538_v19  ;;  %v548_v12 = vmul.f32 %v510_v4, %v510_v4 }
  0xc8   : > { %v415_v32 = vpop.f32.mrf.mxu2  ;;  %v425_v34 = vpop.f32.mrf.mxu3 }
  0xc9   : > { %v554_v35 = vadd.f32 %v553_v25, %v539_v23  ;;  %v517_v36 = vadd.f32 %v516_v24, %v502_v15  ;;  %v416_v37 = vadd.f32 %v895_v16, %v415_v32  ;;  %v426_v39 = vadd.f32 %v895_v16, %v425_v34 }
  0xca   : > { %v549_v15 = vmul.f32 %v511_v11, %v511_v11 }
  0xcb   : > { %v518_v44 = vadd.f32 %v517_v36, %v503_v27  ;;  %v555_v46 = vadd.f32 %v554_v35, %v540_v26  ;;  %439 = vst [vmem:[%s900_s27 + $0x58] sm:$0xff] %v416_v37  ;;  %v508_v45 = vsel %vm492_vm11, %v416_v37, 0.0  ;;  %v512_v31 = vsel %vm496_vm15, %v426_v39, 0.0 }
  0xcc   : > { %443 = vst [vmem:[%s900_s27 + $0x78] sm:$0xff] %v426_v39  ;;  %v546_v6 = vmul.f32 %v508_v45, %v508_v45  ;;  %v550_v20 = vmul.f32 %v512_v31, %v512_v31 }
  0xcd   : > { %v519_v16 = vadd.f32 %v518_v44, %v504_v40  ;;  %v556_v51 = vadd.f32 %v555_v46, %v541_v43 }
  0xcf   : > { %v520_v56 = vadd.f32 %v519_v16, %v505_v47  ;;  %v557_v57 = vadd.f32 %v556_v51, %v542_v50 }
  0xd1   : > { %v558_v60 = vadd.f32 %v557_v57, %v543_v55  ;;  %v521_v61 = vadd.f32 %v520_v56, %v506_v53 }
  0xd3   : > { %v522_v63 = vadd.f32 %v521_v61, %v507_v58  ;;  %v559_v1 = vadd.f32 %v558_v60, %v544_v59 }
  0xd5   : > { %v560_v5 = vadd.f32 %v559_v1, %v545_v0  ;;  %v523_v22 = vadd.f32 %v522_v63, %v508_v45 }
  0xd7   : > { %v524_v9 = vadd.f32 %v523_v22, %v509_v3  ;;  %v561_v10 = vadd.f32 %v560_v5, %v546_v6 }
  0xd9   : > { %v562_v13 = vadd.f32 %v561_v10, %v547_v7  ;;  %v525_v33 = vadd.f32 %v524_v9, %v510_v4 }
  0xdb   : > { %v526_v14 = vadd.f32 %v525_v33, %v511_v11  ;;  %v563_v17 = vadd.f32 %v562_v13, %v548_v12 }
  0xdd   : > { %v564_v18 = vadd.f32 %v563_v17, %v549_v15  ;;  %v527_v19 = vadd.f32 %v526_v14, %v512_v31 }
  0xdf   : > { %v528_v48 = vrot.slane %v527_v19, 4  ;;  %v565_v21 = vadd.f32 %v564_v18, %v550_v20 }
  0xe1   : > { %v529_v23 = vadd.f32 %v528_v48, %v527_v19  ;;  %v566_v24 = vrot.slane %v565_v21, 4 }
  0xe3   : > { %v530_v25 = vrot.slane %v529_v23, 2  ;;  %v567_v38 = vadd.f32 %v566_v24, %v565_v21 }
  0xe5   : > { %v531_v8 = vadd.f32 %v530_v25, %v529_v23  ;;  %v568_v26 = vrot.slane %v567_v38, 2 }
  0xe7   : > { %v532_v27 = vrot.slane %v531_v8, 1  ;;  %v569_v29 = vadd.f32 %v568_v26, %v567_v38 }
  0xe9   : > { %v533_v30 = vadd.f32 %v532_v27, %v531_v8  ;;  %v570_v32 = vrot.slane %v569_v29, 1 }
  0xeb   : > { %534 = vst [vmem:[%s243_s8] sm:$0x1] %v533_v30  ;;  %v571_v34 = vadd.f32 %v570_v32, %v569_v29 }
  0xed   : > { %572 = vst [vmem:[%s246_s11] sm:$0x1] %v571_v34 }
  0xee PF: > { %s18_s23 = sadd.s32 1, %s810_s23  }
  0xef   : > { %p15_p5 = scmp.ge.s32.totalorder %s18_s23, 5  }
  0xf1   :  { %17 = sbr.rel (!%p15_p5) target bundleno = 2 (0x2), region = 86 }

// kernel: mlp_layer_forward.3
= control target key start
LH: loop header
LB: loop body
LE: loop exit
PB: predicated region body
PF: predicated region fallthrough
CT: control target
= control target key end

     0   :  { %s750_s29 = smov 0   ;;  %s869_s0 = inlined_call_operand.<no memory space> [shape: s32[1], index: 0, kind: input, shape index: {}]   ;;  %s870_s1 = inlined_call_operand.vmem [shape: f32[384,128], index: 1, kind: input, shape index: {}]   ;;  %s871_s2 = inlined_call_operand.vmem [shape: f32[3,1,128], index: 2, kind: input, shape index: {}]   ;;  %s872_s3 = inlined_call_operand.vmem [shape: f32[3,1,128], index: 3, kind: input, shape index: {}]   ;;  %s873_s4 = inlined_call_operand.vmem [shape: f32[1,128], index: 4, kind: input, shape index: {}]   ;;  %s874_s5 = inlined_call_operand.vmem [shape: f32[1,128], index: 5, kind: input, shape index: {}]   ;;  %s875_s6 = inlined_call_operand.vmem [shape: bf16[128,128], index: 6, kind: input, shape index: {}]   ;;  %s876_s7 = inlined_call_operand.vmem [shape: f32[1,128], index: 7, kind: input, shape index: {}]   ;;  %s877_s8 = inlined_call_operand.vmem [shape: f32[384,128], index: 8, kind: output, shape index: {}]  }
   0x1   :  { %13 = sst [smem:[#allocation3]] %s869_s0 }
   0x2 LB: > { %s606_s30 = sadd.s32 4294967295, %s700_s29   ;;  %p610_p0 = scmp.ge.s32.totalorder %s700_s29, 1  ;;  %s700_s29 = sphi %s750_s29, %s19_s29  }
   0x3   : > { %p240_p1 = scmp.lt.s32.totalorder %s700_s29, 4 }
   0x5   : > { %p241_p2 = pnand %p610_p0, %p240_p1 }
   0x6   : > { %s284_s0 = sld [smem:[#allocation3]] (!%p241_p2)  ;;  %s611_s17 = sshll.u32 (!%p241_p2), %s606_s30, 4 }
   0x7   : > { %244 = sbr.rel (%p241_p2) target bundleno = 235 (0xeb), region = 48  ;;  %p273_p3 = scmp.lt.s32.totalorder (!%p241_p2), %s611_s17, 47 }
   0xc   : > { %v656_v0 = vld [vmem:[%s875_s6 + $0x38] sm:$0xff]  ;;  %v655_v1 = vld [vmem:[%s875_s6 + $0x30] sm:$0xff]  ;;  %v654_v2 = vld [vmem:[%s875_s6 + $0x28] sm:$0xff]  ;;  %s285_s15 = scvt.s32.f32 %s284_s0  ;;  %vm289_vm0 = vcmask 1040384   ;;  %s879_s17 = smov (!%p273_p3, %s611_s17), 47 }
   0xd   : > { %485 = vmatpush.bf16.msra.mxu0 %v656_v0  ;;  %657 = vmatpush.bf16.msra.mxu1 %v656_v0  ;;  %v653_v4 = vld [vmem:[%s875_s6 + $0x20] sm:$0xff]  ;;  %v652_v9 = vld [vmem:[%s875_s6 + $0x18] sm:$0xff]  ;;  %v651_v21 = vld [vmem:[%s875_s6 + $0x10] sm:$0xff]  ;;  %s612_s18 = sshll.u32 %s879_s17, 3 }
   0xe   : > { %658 = vmatpush.bf16.msra.mxu2 %v656_v0  ;;  %659 = vmatpush.bf16.msra.mxu3 %v656_v0  ;;  %v303_v3 = vstv %s285_s15  ;;  %v286_v5 = vld [vmem:[%s871_s2] sm:$0x1]  ;;  %v287_v6 = vld [vmem:[%s871_s2 + $0x1] sm:$0x1]  ;;  %v288_v15 = vld [vmem:[%s871_s2 + $0x2] sm:$0x1]  ;;  %s816_s21 = scalar_lea.vmem %s870_s1, %s612_s18  ;;  %s848_s9 = scalar_lea.vmem %s877_s8, %s612_s18 }
   0xf   : > { %690 = vrcp.f32 %v303_v3  ;;  %v295_v7 = vld [vmem:[%s872_s3] sm:$0x1]  ;;  %v296_v8 = vld [vmem:[%s872_s3 + $0x1] sm:$0x1]  ;;  %v290_v10 = vsel %vm289_vm0, %v286_v5, 0.0  ;;  %v291_v11 = vsel %vm289_vm0, %v287_v6, 0.0  ;;  %vm309_vm1 = vweird.f32 %v303_v3 }
  0x10   : > { %v298_v12 = vsel %vm289_vm0, %v295_v7, 0.0  ;;  %v299_v13 = vsel %vm289_vm0, %v296_v8, 0.0  ;;  %v297_v16 = vld [vmem:[%s872_s3 + $0x2] sm:$0x1]  ;;  %v292_v18 = vadd.f32 %v291_v11, %v290_v10  ;;  %v315_v20 = vand.u32 2147483648, %v303_v3  ;;  %v650_v28 = vld [vmem:[%s875_s6 + $0x8] sm:$0xff] }
  0x11   : > { %486 = vmatpush.bf16.msra.mxu0 %v655_v1  ;;  %660 = vmatpush.bf16.msra.mxu1 %v655_v1  ;;  %v300_v19 = vadd.f32 %v299_v13, %v298_v12  ;;  %v313_v23 = vand.u32 2147483647, %v303_v3  ;;  %v293_v24 = vsel %vm289_vm0, %v288_v15, 0.0  ;;  %v301_v25 = vsel %vm289_vm0, %v297_v16, 0.0  ;;  %v649_v34 = vld [vmem:[%s875_s6] sm:$0xff]  ;;  %v340_v52 = vld [vmem:[%s816_s21 + $0x8] sm:$0xff] }
  0x12   : > { %661 = vmatpush.bf16.msra.mxu2 %v655_v1  ;;  %662 = vmatpush.bf16.msra.mxu3 %v655_v1  ;;  %v316_v27 = vor.u32 1.1754944e-38, %v315_v20  ;;  %v294_v29 = vadd.f32 %v293_v24, %v292_v18  ;;  %v323_v46 = vld [vmem:[%s873_s4] sm:$0x1]  ;;  %v344_v54 = vld [vmem:[%s816_s21 + $0x28] sm:$0xff]  ;;  %v341_v15 = vld [vmem:[%s816_s21 + $0x10] sm:$0xff] }
  0x13   : > { %v302_v30 = vadd.f32 %v301_v25, %v300_v19  ;;  %vm314_vm4 = vcmp.eq.f32.partialorder %v313_v23, 8.507059e+37  ;;  %v336_v50 = vld [vmem:[%s874_s5] sm:$0x1]  ;;  %v348_v58 = vld [vmem:[%s816_s21 + $0x48] sm:$0xff]  ;;  %v342_v20 = vld [vmem:[%s816_s21 + $0x18] sm:$0xff] }
  0x14   : > { %v339_v51 = vld [vmem:[%s816_s21] sm:$0xff]  ;;  %v352_v60 = vld [vmem:[%s816_s21 + $0x68] sm:$0xff] }
  0x15   : > { %487 = vmatpush.bf16.msra.mxu0 %v654_v2  ;;  %663 = vmatpush.bf16.msra.mxu1 %v654_v2  ;;  %v691_v14 = vpop.eup %690  ;;  %v343_v53 = vld [vmem:[%s816_s21 + $0x20] sm:$0xff] }
  0x16   : > { %664 = vmatpush.bf16.msra.mxu2 %v654_v2  ;;  %665 = vmatpush.bf16.msra.mxu3 %v654_v2  ;;  %v305_v17 = vmul.f32 %v691_v14, %v303_v3  ;;  %vm310_vm2 = vweird.f32 %v691_v14  ;;  %v347_v57 = vld [vmem:[%s816_s21 + $0x40] sm:$0xff] }
  0x17   : > { %vm311_vm3 = vmor %vm309_vm1, %vm310_vm2  ;;  %v351_v59 = vld [vmem:[%s816_s21 + $0x60] sm:$0xff] }
  0x18   : > { %v306_v22 = vsub.f32 1.0, %v305_v17 }
  0x19   : > { %488 = vmatpush.bf16.msra.mxu0 %v653_v4  ;;  %666 = vmatpush.bf16.msra.mxu1 %v653_v4 }
  0x1a   : > { %667 = vmatpush.bf16.msra.mxu2 %v653_v4  ;;  %668 = vmatpush.bf16.msra.mxu3 %v653_v4  ;;  %v307_v26 = vmul.f32 %v691_v14, %v306_v22 }
  0x1c   : > { %v308_v31 = vadd.f32 %v691_v14, %v307_v26  ;;  %v346_v26 = vld [vmem:[%s816_s21 + $0x38] sm:$0xff] }
  0x1d   : > { %489 = vmatpush.bf16.msra.mxu0 %v652_v9  ;;  %669 = vmatpush.bf16.msra.mxu1 %v652_v9 }
  0x1e   : > { %670 = vmatpush.bf16.msra.mxu2 %v652_v9  ;;  %671 = vmatpush.bf16.msra.mxu3 %v652_v9  ;;  %v312_v32 = vsel %vm311_vm3, %v691_v14, %v308_v31  ;;  %v353_v31 = vld [vmem:[%s816_s21 + $0x70] sm:$0xff] }
  0x1f   : > { %v317_v33 = vsel %vm314_vm4, %v316_v27, %v312_v32  ;;  %v349_v27 = vld [vmem:[%s816_s21 + $0x50] sm:$0xff]  ;;  %v354_v32 = vld [vmem:[%s816_s21 + $0x78] sm:$0xff] }
  0x20   : > { %v318_v35 = vmul.f32 %v317_v33, %v294_v29  ;;  %v319_v36 = vmul.f32 %v317_v33, %v302_v30  ;;  %v350_v30 = vld [vmem:[%s816_s21 + $0x58] sm:$0xff] }
  0x21   : > { %490 = vmatpush.bf16.msra.mxu0 %v651_v21  ;;  %672 = vmatpush.bf16.msra.mxu1 %v651_v21 }
  0x22   : > { %673 = vmatpush.bf16.msra.mxu2 %v651_v21  ;;  %674 = vmatpush.bf16.msra.mxu3 %v651_v21  ;;  %v320_v37 = vmul.f32 %v318_v35, %v318_v35  ;;  %v345_v21 = vld [vmem:[%s816_s21 + $0x30] sm:$0xff] }
  0x24   : > { %v321_v38 = vsub.f32 %v319_v36, %v320_v37 }
  0x25   : > { %491 = vmatpush.bf16.msra.mxu0 %v650_v28  ;;  %675 = vmatpush.bf16.msra.mxu1 %v650_v28 }
  0x26   : > { %676 = vmatpush.bf16.msra.mxu2 %v650_v28  ;;  %677 = vmatpush.bf16.msra.mxu3 %v650_v28  ;;  %v322_v39 = vmax.f32 %v321_v38, 0.0 }
  0x28   : > { %v324_v40 = vadd.f32 1e-05, %v322_v39 }
  0x29   : > { %492 = vmatpush.bf16.msra.mxu0 %v649_v34  ;;  %678 = vmatpush.bf16.msra.mxu1 %v649_v34 }
  0x2a   : > { %679 = vmatpush.bf16.msra.mxu2 %v649_v34  ;;  %680 = vmatpush.bf16.msra.mxu3 %v649_v34  ;;  %692 = vrsqrt.f32 %v324_v40  ;;  %vm331_vm5 = vweird.f32 %v324_v40 }
  0x30   : > { %v693_v41 = vpop.eup %692 }
  0x31   : > { %v326_v42 = vmul.f32 %v693_v41, %v324_v40  ;;  %vm332_vm6 = vweird.f32 %v693_v41 }
  0x32   : > { %vm333_vm7 = vmor %vm331_vm5, %vm332_vm6 }
  0x33   : > { %v327_v43 = vmul.f32 %v693_v41, %v326_v42 }
  0x35   : > { %v328_v44 = vmul.f32 0.5, %v327_v43 }
  0x37   : > { %v329_v45 = vsub.f32 1.5, %v328_v44 }
  0x39   : > { %v330_v47 = vmul.f32 %v693_v41, %v329_v45 }
  0x3b   : > { %v334_v48 = vsel %vm333_vm7, %v693_v41, %v330_v47 }
  0x3c   : > { %v335_v49 = vmul.f32 %v334_v48, %v323_v46 }
  0x3e   : > { %v337_v55 = vmul.f32 %v335_v49, %v318_v35  ;;  %v356_v56 = vperm.slane %v335_v49, 0 }
  0x40   : > { %v338_v61 = vsub.f32 %v336_v50, %v337_v55  ;;  %v358_v62 = vmul.f32 %v356_v56, %v339_v51  ;;  %v359_v63 = vmul.f32 %v356_v56, %v340_v52  ;;  %v362_v0 = vmul.f32 %v356_v56, %v343_v53 }
  0x41   : > { %v363_v1 = vmul.f32 %v356_v56, %v344_v54  ;;  %v366_v2 = vmul.f32 %v356_v56, %v347_v57  ;;  %v367_v3 = vmul.f32 %v356_v56, %v348_v58  ;;  %v370_v4 = vmul.f32 %v356_v56, %v351_v59 }
  0x42   : > { %v375_v5 = vperm.slane %v338_v61, 0  ;;  %v371_v6 = vmul.f32 %v356_v56, %v352_v60  ;;  %v360_v35 = vmul.f32 %v356_v56, %v341_v15  ;;  %v361_v36 = vmul.f32 %v356_v56, %v342_v20 }
  0x43   : > { %v364_v37 = vmul.f32 %v356_v56, %v345_v21  ;;  %v365_v38 = vmul.f32 %v356_v56, %v346_v26  ;;  %v368_v39 = vmul.f32 %v356_v56, %v349_v27  ;;  %v369_v40 = vmul.f32 %v356_v56, %v350_v30 }
  0x44   : > { %v377_v7 = vadd.f32 %v375_v5, %v358_v62  ;;  %v378_v8 = vadd.f32 %v375_v5, %v359_v63  ;;  %v381_v9 = vadd.f32 %v375_v5, %v362_v0  ;;  %v382_v10 = vadd.f32 %v375_v5, %v363_v1  ;;  %v689_v63 = vld [vmem:[%s876_s7] ss:$0 sm:$0xff] }
  0x45   : > { %v385_v11 = vadd.f32 %v375_v5, %v366_v2  ;;  %v386_v12 = vadd.f32 %v375_v5, %v367_v3  ;;  %v389_v13 = vadd.f32 %v375_v5, %v370_v4  ;;  %v390_v14 = vadd.f32 %v375_v5, %v371_v6 }
  0x46   : > { %v393_v16 = vmax.f32 %v377_v7, 0.0  ;;  %v394_v17 = vmax.f32 %v378_v8, 0.0  ;;  %v397_v18 = vmax.f32 %v381_v9, 0.0  ;;  %v398_v19 = vmax.f32 %v382_v10, 0.0 }
  0x47   : > { %v401_v22 = vmax.f32 %v385_v11, 0.0  ;;  %v402_v23 = vmax.f32 %v386_v12, 0.0  ;;  %v405_v24 = vmax.f32 %v389_v13, 0.0  ;;  %v406_v25 = vmax.f32 %v390_v14, 0.0 }
  0x48   : > { %v409_v28 = vpack.c.bf16 %v394_v17, %v393_v16  ;;  %v411_v29 = vpack.c.bf16 %v398_v19, %v397_v18  ;;  %v372_v41 = vmul.f32 %v356_v56, %v353_v31  ;;  %v373_v42 = vmul.f32 %v356_v56, %v354_v32 }
  0x49   : > { %v413_v33 = vpack.c.bf16 %v402_v23, %v401_v22  ;;  %v415_v34 = vpack.c.bf16 %v406_v25, %v405_v24  ;;  %v379_v43 = vadd.f32 %v375_v5, %v360_v35  ;;  %v380_v44 = vadd.f32 %v375_v5, %v361_v36 }
  0x4a   : > { %493 = vmatmul.bf16.vlgmr.msra.gmra.mxu0 %v409_v28  ;;  %503 = vmatmul.bf16.vlgmr.msra.gmra.mxu1 %v411_v29  ;;  %v383_v45 = vadd.f32 %v375_v5, %v364_v37  ;;  %v384_v46 = vadd.f32 %v375_v5, %v365_v38  ;;  %v387_v47 = vadd.f32 %v375_v5, %v368_v39 }
  0x4b   : > { %513 = vmatmul.bf16.vlgmr.msra.gmra.mxu2 %v413_v33  ;;  %523 = vmatmul.bf16.vlgmr.msra.gmra.mxu3 %v415_v34  ;;  %v388_v48 = vadd.f32 %v375_v5, %v369_v40  ;;  %v391_v49 = vadd.f32 %v375_v5, %v372_v41  ;;  %v392_v50 = vadd.f32 %v375_v5, %v373_v42  ;;  %v395_v51 = vmax.f32 %v379_v43, 0.0 }
  0x4c   : > { %v396_v52 = vmax.f32 %v380_v44, 0.0  ;;  %v399_v53 = vmax.f32 %v383_v45, 0.0  ;;  %v400_v54 = vmax.f32 %v384_v46, 0.0  ;;  %v403_v55 = vmax.f32 %v387_v47, 0.0 }
  0x4d   : > { %v404_v57 = vmax.f32 %v388_v48, 0.0  ;;  %v407_v58 = vmax.f32 %v391_v49, 0.0  ;;  %v408_v59 = vmax.f32 %v392_v50, 0.0 }
  0x4e   : > { %v410_v60 = vpack.c.bf16 %v396_v52, %v395_v51  ;;  %v412_v61 = vpack.c.bf16 %v400_v54, %v399_v53 }
  0x4f   : > { %v414_v56 = vpack.c.bf16 %v404_v57, %v403_v55  ;;  %v416_v62 = vpack.c.bf16 %v408_v59, %v407_v58 }
  0x5a   : > { %498 = vmatmul.bf16.gmra.mxu0 %v410_v60  ;;  %508 = vmatmul.bf16.gmra.mxu1 %v412_v61 }
  0x5b   : > { %518 = vmatmul.bf16.gmra.mxu2 %v414_v56  ;;  %528 = vmatmul.bf16.gmra.mxu3 %v416_v62 }
  0xc7   : > { %v494_v0 = vpop.f32.mrf.mxu0  ;;  %v504_v1 = vpop.f32.mrf.mxu1 }
  0xc8   : > { %v495_v2 = vadd.f32 %v689_v63, %v494_v0  ;;  %v505_v3 = vadd.f32 %v689_v63, %v504_v1 }
  0xca   : > { %534 = vst [vmem:[%s848_s9] sm:$0xff] %v495_v2 }
  0xcb   : > { %538 = vst [vmem:[%s848_s9 + $0x20] sm:$0xff] %v505_v3 }
  0xce   : > { %v514_v4 = vpop.f32.mrf.mxu2  ;;  %v524_v5 = vpop.f32.mrf.mxu3 }
  0xcf   : > { %v515_v6 = vadd.f32 %v689_v63, %v514_v4  ;;  %v525_v7 = vadd.f32 %v689_v63, %v524_v5  ;;  %v496_v8 = vpop.f32.mrf.mxu0  ;;  %v506_v9 = vpop.f32.mrf.mxu1 }
  0xd0   : > { %v497_v10 = vadd.f32 %v689_v63, %v496_v8  ;;  %v507_v11 = vadd.f32 %v689_v63, %v506_v9 }
  0xd1   : > { %542 = vst [vmem:[%s848_s9 + $0x40] sm:$0xff] %v515_v6 }
  0xd2   : > { %546 = vst [vmem:[%s848_s9 + $0x60] sm:$0xff] %v525_v7 }
  0xd3   : > { %535 = vst [vmem:[%s848_s9 + $0x8] sm:$0xff] %v497_v10 }
  0xd4   : > { %539 = vst [vmem:[%s848_s9 + $0x28] sm:$0xff] %v507_v11 }
  0xd6   : > { %v516_v12 = vpop.f32.mrf.mxu2  ;;  %v526_v13 = vpop.f32.mrf.mxu3 }
  0xd7   : > { %v517_v14 = vadd.f32 %v689_v63, %v516_v12  ;;  %v527_v15 = vadd.f32 %v689_v63, %v526_v13  ;;  %v499_v16 = vpop.f32.mrf.mxu0  ;;  %v509_v17 = vpop.f32.mrf.mxu1 }
  0xd8   : > { %v500_v18 = vadd.f32 %v689_v63, %v499_v16  ;;  %v510_v19 = vadd.f32 %v689_v63, %v509_v17 }
  0xd9   : > { %543 = vst [vmem:[%s848_s9 + $0x48] sm:$0xff] %v517_v14 }
  0xda   : > { %547 = vst [vmem:[%s848_s9 + $0x68] sm:$0xff] %v527_v15 }
  0xdb   : > { %536 = vst [vmem:[%s848_s9 + $0x10] sm:$0xff] %v500_v18 }
  0xdc   : > { %540 = vst [vmem:[%s848_s9 + $0x30] sm:$0xff] %v510_v19 }
  0xde   : > { %v519_v20 = vpop.f32.mrf.mxu2  ;;  %v529_v21 = vpop.f32.mrf.mxu3 }
  0xdf   : > { %v520_v22 = vadd.f32 %v689_v63, %v519_v20  ;;  %v530_v23 = vadd.f32 %v689_v63, %v529_v21  ;;  %v501_v24 = vpop.f32.mrf.mxu0  ;;  %v511_v25 = vpop.f32.mrf.mxu1 }
  0xe0   : > { %v502_v26 = vadd.f32 %v689_v63, %v501_v24  ;;  %v512_v27 = vadd.f32 %v689_v63, %v511_v25 }
  0xe1   : > { %544 = vst [vmem:[%s848_s9 + $0x50] sm:$0xff] %v520_v22 }
  0xe2   : > { %548 = vst [vmem:[%s848_s9 + $0x70] sm:$0xff] %v530_v23 }
  0xe3   : > { %537 = vst [vmem:[%s848_s9 + $0x18] sm:$0xff] %v502_v26 }
  0xe4   : > { %541 = vst [vmem:[%s848_s9 + $0x38] sm:$0xff] %v512_v27 }
  0xe6   : > { %v521_v28 = vpop.f32.mrf.mxu2  ;;  %v531_v29 = vpop.f32.mrf.mxu3 }
  0xe7   : > { %v522_v30 = vadd.f32 %v689_v63, %v521_v28  ;;  %v532_v31 = vadd.f32 %v689_v63, %v531_v29 }
  0xe9   : > { %545 = vst [vmem:[%s848_s9 + $0x58] sm:$0xff] %v522_v30 }
  0xea   : > { %549 = vst [vmem:[%s848_s9 + $0x78] sm:$0xff] %v532_v31 }
  0xeb PF: > { %s19_s29 = sadd.s32 1, %s700_s29  }
  0xec   : > { %p16_p4 = scmp.ge.s32.totalorder %s19_s29, 5  }
  0xee   :  { %18 = sbr.rel (!%p16_p4) target bundleno = 2 (0x2), region = 78 }

</bundles_post_ra>
